<compile_context>
chip_gen: v5e
topology: v5e:2x2
jax: 0.10.0
libtpu: 0.0.40
codegen_flags: <defaults>
</compile_context>

<pallas_src>
import math
import numpy as np
import jax
import jax.numpy as jnp
from jax import lax
from jax.experimental import pallas as pl
from jax.experimental.pallas import tpu as pltpu

FEATURE_SIZES = (12, 31, 24, 4, 7)     # nn.Embedding vocab sizes
EMB_DIM = 4
N_TIME = len(FEATURE_SIZES)
TOTAL_ROWS = sum(FEATURE_SIZES)        # 78
TIME_OUT = EMB_DIM * N_TIME            # 20
OFFSETS = tuple(int(o) for o in np.cumsum((0,) + FEATURE_SIZES[:-1]))
SEL_COLS = (0, 2, 3, 4, 5, 6, 7, 8)    # X columns used: pa | cxt0 cxt1 | 5 time


def _round_up(a, b):
    return (a + b - 1) // b * b


def _cdiv(a, b):
    return (a + b - 1) // b


def _time_constants():
    """segT [78, 5]: 0/1 segment membership per embedding row;
       localT [78, 1]: within-segment local index per embedding row."""
    segT = np.zeros((TOTAL_ROWS, N_TIME), np.float32)
    localT = np.zeros((TOTAL_ROWS, 1), np.float32)
    for i, (off, sz) in enumerate(zip(OFFSETS, FEATURE_SIZES)):
        segT[off:off + sz, i] = 1.0
        localT[off:off + sz, 0] = np.arange(sz, dtype=np.float32)
    return segT, localT


_SEGT_NP, _LOCALT_NP = _time_constants()


# ---------------------------------------------------------------------------
# Kernel
# ---------------------------------------------------------------------------
def _emb_body(x, bg, sel, segT, localT, tableT, cxt_ref, pa_ref, time_ref):
    """x: [tm, F] (tokens, features) -> lane-dense outputs
       cxt_ref [2, tm], pa_ref [P, tm], time_ref [20, tm]."""
    tm = x.shape[0]
    P = pa_ref.shape[0]
    xf = x.astype(jnp.float32)

    # Row->lane relayout of the 8 used columns via ONE tiny NT matmul against
    # a 0/1 selector (no XLU transpose): xsel[j, l] = X[l, SEL_COLS[j]].
    # Exact for the (integer-valued) index columns; ~1 ulp for the 2 floats.
    xsel = lax.dot_general(sel, xf, (((1,), (1,)), ((), ())),
                           preferred_element_type=jnp.float32)        # [8, tm]

    # ---- X_cxt = X[..., 2:4] --------------------------------------------
    cxt_ref[...] = xsel[1:3, :].astype(cxt_ref.dtype)

    # ---- X_pa = pa_onehot.scatter_(-1, X[..., :1].long(), 1.0) -----------
    pa_idx = xsel[0:1, :].astype(jnp.int32)        # trunc toward zero == .long()
    rows_p = lax.broadcasted_iota(jnp.int32, (P, tm), 0)
    hit = rows_p == pa_idx                                            # [P, tm]
    if bg is None:
        # Caller guarantees a zero background -> skip the [M, P] HBM stream.
        pa_ref[...] = hit.astype(pa_ref.dtype)
    else:
        # Transpose the background with an identity NT matmul (MXU, exact
        # up to ~1 ulp) instead of an XLU transpose.
        eye = (lax.broadcasted_iota(jnp.int32, (P, P), 0) ==
               lax.broadcasted_iota(jnp.int32, (P, P), 1)).astype(jnp.float32)
        bgT = lax.dot_general(eye, bg.astype(jnp.float32),
                              (((1,), (1,)), ((), ())),
                              preferred_element_type=jnp.float32)     # [P, tm]
        pa_ref[...] = jnp.where(hit, 1.0, bgT).astype(pa_ref.dtype)

    # ---- X_time: 5 embedding lookups --------------------------------------
    # target[r, l] = time index of segment(r) for token l   (MXU gather, exact)
    # onehot[r, l] = (target == local index of r)           (single VPU compare)
    # time         = block_diag(tables)^T @ onehot          (single MXU matmul)
    t_idx = xsel[3:3 + N_TIME, :].astype(jnp.int32).astype(jnp.float32)
    target = jnp.dot(segT, t_idx, preferred_element_type=jnp.float32)  # [78,tm]
    onehot = (target == localT).astype(jnp.float32)
    time_ref[...] = jnp.dot(tableT, onehot,
                            preferred_element_type=jnp.float32
                            ).astype(time_ref.dtype)


def _kernel_zero_bg(x_ref, sel_ref, segT_ref, localT_ref, tableT_ref,
                    cxt_ref, pa_ref, time_ref):
    _emb_body(x_ref[...], None, sel_ref[...], segT_ref[...], localT_ref[...],
              tableT_ref[...], cxt_ref, pa_ref, time_ref)


def _kernel_with_bg(x_ref, bg_ref, sel_ref, segT_ref, localT_ref, tableT_ref,
                    cxt_ref, pa_ref, time_ref):
    _emb_body(x_ref[...], bg_ref[...], sel_ref[...], segT_ref[...],
              localT_ref[...], tableT_ref[...], cxt_ref, pa_ref, time_ref)


# ---------------------------------------------------------------------------
# Tiling / VMEM helpers
# ---------------------------------------------------------------------------
def _choose_tile(M, tm_max=1024, min_steps=8):
    """tm is the lane axis of the transposed outputs -> multiple of 128 (or the
    full extent M).  Prefer >= min_steps grid steps (v7x megacore: >=3-4 blocks
    per TensorCore) before letting tm drop below 512.  No forced padding: the
    ragged last block is clipped by Pallas."""
    if M <= 128:
        return max(M, 1), 1                      # single full-extent block
    tm_max = max(128, (tm_max // 128) * 128)
    tm = min(tm_max, (M // 128) * 128)
    while _cdiv(M, tm) < min_steps and tm > 512:
        tm = max(512, ((tm // 2) // 128) * 128)
    return tm, _cdiv(M, tm)


def _vmem_limit_bytes(tm, F, P, with_bg):
    """Lane-padded footprint estimate: double-buffered pipeline I/O + body
    temporaries, with headroom.  Floor 32 MiB (default scoped limit on v7x),
    cap 48 MiB (< v7x's 64 MiB physical; far below v5e/v6e's 128 MiB)."""
    def pad(r, c):
        return _round_up(max(r, 1), 8) * _round_up(max(c, 1), 128) * 4
    io = pad(tm, F) + (pad(tm, P) if with_bg else 0) \
        + pad(2, tm) + pad(P, tm) + pad(TIME_OUT, tm)
    tmp = pad(8, tm) + 2 * pad(TOTAL_ROWS, tm) + 2 * pad(P, tm) + pad(N_TIME, tm)
    est = 2 * io + tmp
    return int(min(max(2 * est, 32 << 20), 48 << 20))


# ---------------------------------------------------------------------------
# Wrapper
# ---------------------------------------------------------------------------
def feature_emb(X, pa_onehot, table, *, tm_max=1024, zero_pa_background=False,
                out_dtype=None, layout="bntc"):
    """X: (B, N, T, F); pa_onehot: (B, N, T, P); table: [78, 20] block-diagonal
    concatenation of the 5 embedding tables.

    layout="bntc": returns (X_cxt, X_pa, X_time) in module layout (B,N,T,C).
    layout="cm":   returns the lane-dense (C, B*N*T) slabs straight from the
                   kernel (no epilogue relayout) for fused consumers."""
    B, N, T, F = X.shape
    P = pa_onehot.shape[-1]
    assert F >= 4 + N_TIME
    M = B * N * T
    out_dtype = X.dtype if out_dtype is None else out_dtype

    tm, n_steps = _choose_tile(M, tm_max)

    # Free reshapes (metadata only) — no pad / astype HBM passes.
    x2 = X.reshape(M, F)

    sel = np.zeros((8, F), np.float32)
    for j, c in enumerate(SEL_COLS):
        sel[j, c] = 1.0

    inputs = [x2]
    in_specs = [pl.BlockSpec((tm, F), lambda i: (i, 0))]
    if zero_pa_background:
        kernel = _kernel_zero_bg
    else:
        kernel = _kernel_with_bg
        inputs.append(pa_onehot.reshape(M, P))       # native dtype, cast in-kernel
        in_specs.append(pl.BlockSpec((tm, P), lambda i: (i, 0)))

    # Tiny constants, block index pinned to (0, 0) -> fetched once, resident.
    inputs += [jnp.asarray(sel), jnp.asarray(_SEGT_NP), jnp.asarray(_LOCALT_NP),
               table.astype(jnp.float32).T]
    in_specs += [
        pl.BlockSpec((8, F), lambda i: (0, 0)),
        pl.BlockSpec((TOTAL_ROWS, N_TIME), lambda i: (0, 0)),
        pl.BlockSpec((TOTAL_ROWS, 1), lambda i: (0, 0)),
        pl.BlockSpec((TIME_OUT, TOTAL_ROWS), lambda i: (0, 0)),
    ]

    out_shape = (jax.ShapeDtypeStruct((2, M), out_dtype),
                 jax.ShapeDtypeStruct((P, M), out_dtype),
                 jax.ShapeDtypeStruct((TIME_OUT, M), out_dtype))
    out_specs = [pl.BlockSpec((2, tm), lambda i: (0, i)),
                 pl.BlockSpec((P, tm), lambda i: (0, i)),
                 pl.BlockSpec((TIME_OUT, tm), lambda i: (0, i))]

    cxt_T, pa_T, time_T = pl.pallas_call(
        kernel,
        out_shape=out_shape,
        grid_spec=pltpu.PrefetchScalarGridSpec(
            num_scalar_prefetch=0,
            grid=(n_steps,),
            in_specs=in_specs,
            out_specs=out_specs),
        compiler_params=pltpu.CompilerParams(
            dimension_semantics=("parallel",),
            vmem_limit_bytes=_vmem_limit_bytes(tm, F, P,
                                               not zero_pa_background)),
    )(*inputs)

    if layout == "cm":
        return cxt_T, pa_T, time_T

    # Module-layout views; these transposes are plain XLA ops that fuse into
    # downstream consumers (use layout="cm" to skip them entirely).
    x_cxt = cxt_T.T.reshape(B, N, T, 2)
    x_pa = pa_T.T.reshape(B, N, T, P)
    x_time = time_T.T.reshape(B, N, T, TIME_OUT)
    return x_cxt, x_pa, x_time


# ---------------------------------------------------------------------------
# Parameters / reference (for the self-test)
# ---------------------------------------------------------------------------
def make_embedding_tables(key):
    """Deterministic xavier_uniform(gain=sqrt(2)) init, like the module."""
    gain = math.sqrt(2.0)
    tables = []
    for s in FEATURE_SIZES:
        key, sub = jax.random.split(key)
        a = gain * math.sqrt(6.0 / (s + EMB_DIM))
        tables.append(jax.random.uniform(sub, (s, EMB_DIM), minval=-a,
                                         maxval=a, dtype=jnp.float32))
    block = jnp.zeros((TOTAL_ROWS, TIME_OUT), jnp.float32)
    for i, (off, tab) in enumerate(zip(OFFSETS, tables)):
        block = block.at[off:off + FEATURE_SIZES[i],
                         EMB_DIM * i:EMB_DIM * (i + 1)].set(tab)
    return tables, block


def reference(X, pa_onehot, tables):
    idx = X[..., 4:4 + N_TIME].astype(jnp.int32)       # trunc, like .long()
    x_time = jnp.concatenate(
        [tables[i][idx[..., i]] for i in range(N_TIME)], axis=-1)
    x_cxt = X[..., 2:4]
    pa_idx = X[..., 0].astype(jnp.int32)
    one = jax.nn.one_hot(pa_idx, pa_onehot.shape[-1], dtype=jnp.float32)
    x_pa = jnp.where(one > 0, 1.0, pa_onehot)
    return x_cxt, x_pa, x_time


if __name__ == "__main__":
    key = jax.random.PRNGKey(0)
    key, k_tab = jax.random.split(key)
    tables, table_block = make_embedding_tables(k_tab)

    def make_inputs(key, B, N, T_in, F, P):
        key, k_x, k_pa, k_bg = jax.random.split(key, 4)
        X = jax.random.normal(k_x, (B, N, T_in, F), dtype=jnp.float32)
        pa_idx = jax.random.randint(k_pa, (B, N, T_in), 0, P).astype(jnp.float32)
        X = X.at[..., 0].set(pa_idx)
        for i, s in enumerate(FEATURE_SIZES):
            key, sub = jax.random.split(key)
            ti = jax.random.randint(sub, (B, N, T_in), 0, s).astype(jnp.float32)
            X = X.at[..., 4 + i].set(ti)
        bg = 0.5 * jax.random.uniform(k_bg, (B, N, T_in, P), dtype=jnp.float32)
        return X, bg

    def check(out, X, bg):
        x_cxt, x_pa, x_time = out
        r_cxt, r_pa, r_time = reference(X, bg, tables)
        np.testing.assert_allclose(np.asarray(x_cxt), np.asarray(r_cxt), atol=1e-5)
        np.testing.assert_allclose(np.asarray(x_pa), np.asarray(r_pa), atol=1e-5)
        np.testing.assert_allclose(np.asarray(x_time), np.asarray(r_time), atol=1e-5)

    # Small config: M = 64 -> single full-extent block.
    B, N, T_in, F, P = 2, 4, 8, 16, 8
    X, bg = make_inputs(key, B, N, T_in, F, P)
    zeros = jnp.zeros((B, N, T_in, P), jnp.float32)

    fast = feature_emb(X, zeros, table_block, zero_pa_background=True)
    gen = feature_emb(X, bg, table_block)
    jax.block_until_ready((fast, gen))
    check(fast, X, zeros)
    check(gen, X, bg)

    # Lane-dense ("cm") layout: (C, M) slabs straight from the kernel.
    cxt_T, pa_T, time_T = feature_emb(X, bg, table_block, layout="cm")
    jax.block_until_ready((cxt_T, pa_T, time_T))
    M = B * N * T_in
    assert cxt_T.shape == (2, M) and pa_T.shape == (P, M) \
        and time_T.shape == (TIME_OUT, M)
    check((cxt_T.T.reshape(B, N, T_in, 2), pa_T.T.reshape(B, N, T_in, P),
           time_T.T.reshape(B, N, T_in, TIME_OUT)), X, bg)

    # Ragged multi-step config: M = 320 -> tm = 256, 2 grid steps, last block
    # ragged (no wrapper-side padding).
    B2, N2, T2 = 2, 4, 40
    X2, bg2 = make_inputs(jax.random.PRNGKey(1), B2, N2, T2, F, P)
    gen2 = feature_emb(X2, bg2, table_block)
    jax.block_until_ready(gen2)
    check(gen2, X2, bg2)

    print("KERNEL_OK")
</pallas_src>

<mosaic_0001>
module attributes {stable_mosaic.version = 11 : i64} {
  func.func @_kernel_zero_bg(%arg0: i32, %arg1: memref<64x16xf32, #tpu.memory_space<vmem>>, %arg2: memref<8x16xf32, #tpu.memory_space<vmem>>, %arg3: memref<78x5xf32, #tpu.memory_space<vmem>>, %arg4: memref<78x1xf32, #tpu.memory_space<vmem>>, %arg5: memref<20x78xf32, #tpu.memory_space<vmem>>, %arg6: memref<2x64xf32, #tpu.memory_space<vmem>>, %arg7: memref<8x64xf32, #tpu.memory_space<vmem>>, %arg8: memref<20x64xf32, #tpu.memory_space<vmem>>) attributes {dimension_semantics = [#tpu.dimension_semantics<parallel>], iteration_bounds = array<i64: 1>, scalar_prefetch = 0 : i64, scratch_operands = 0 : i64, tpu.core_type = #tpu.core_type<tc>, window_params = [{transform_indices = @transform_0, window_bounds = array<i64: 64, 16>}, {pipeline_mode = #tpu.pipeline_mode<synchronous>, transform_indices = @transform_1, window_bounds = array<i64: 8, 16>}, {pipeline_mode = #tpu.pipeline_mode<synchronous>, transform_indices = @transform_2, window_bounds = array<i64: 78, 5>}, {pipeline_mode = #tpu.pipeline_mode<synchronous>, transform_indices = @transform_3, window_bounds = array<i64: 78, 1>}, {pipeline_mode = #tpu.pipeline_mode<synchronous>, transform_indices = @transform_4, window_bounds = array<i64: 20, 78>}, {transform_indices = @transform_5, window_bounds = array<i64: 2, 64>}, {transform_indices = @transform_6, window_bounds = array<i64: 8, 64>}, {transform_indices = @transform_7, window_bounds = array<i64: 20, 64>}]} {
    %c0 = arith.constant 0 : index
    %c0_0 = arith.constant 0 : index
    %0 = vector.load %arg1[%c0, %c0_0] : memref<64x16xf32, #tpu.memory_space<vmem>>, vector<64x16xf32>
    %c0_1 = arith.constant 0 : index
    %c0_2 = arith.constant 0 : index
    %1 = vector.load %arg2[%c0_1, %c0_2] : memref<8x16xf32, #tpu.memory_space<vmem>>, vector<8x16xf32>
    %c0_3 = arith.constant 0 : index
    %c0_4 = arith.constant 0 : index
    %2 = vector.load %arg3[%c0_3, %c0_4] : memref<78x5xf32, #tpu.memory_space<vmem>>, vector<78x5xf32>
    %c0_5 = arith.constant 0 : index
    %c0_6 = arith.constant 0 : index
    %3 = vector.load %arg4[%c0_5, %c0_6] : memref<78x1xf32, #tpu.memory_space<vmem>>, vector<78x1xf32>
    %c0_7 = arith.constant 0 : index
    %c0_8 = arith.constant 0 : index
    %4 = vector.load %arg5[%c0_7, %c0_8] : memref<20x78xf32, #tpu.memory_space<vmem>>, vector<20x78xf32>
    %cst = arith.constant dense<0.000000e+00> : vector<8x64xf32>
    %5 = tpu.matmul %1, %0, %cst {dimension_numbers = #tpu.dot_dimension_numbers<[1], [1], [0], [0], [0, 0, 1, 0], [], []>} : vector<8x16xf32>, vector<64x16xf32>, vector<8x64xf32> -> vector<8x64xf32>
    %6 = vector.extract_strided_slice %5 {offsets = [1, 0], sizes = [2, 64], strides = [1, 1]} : vector<8x64xf32> to vector<2x64xf32>
    %c0_9 = arith.constant 0 : index
    %c0_10 = arith.constant 0 : index
    %7 = vector.load %arg6[%c0_9, %c0_10] : memref<2x64xf32, #tpu.memory_space<vmem>>, vector<2x64xf32>
    tpu.vector_store %arg6[%c0_9, %c0_10], %6 {strides = array<i32>} : memref<2x64xf32, #tpu.memory_space<vmem>>, vector<2x64xf32>,
    %8 = vector.extract_strided_slice %5 {offsets = [0, 0], sizes = [1, 64], strides = [1, 1]} : vector<8x64xf32> to vector<1x64xf32>
    %9 = arith.fptosi %8 : vector<1x64xf32> to vector<1x64xi32>
    %10 = tpu.iota {dimensions = array<i32: 0>} : vector<8x64xi32>
    %11 = vector.broadcast %9 : vector<1x64xi32> to vector<8x64xi32>
    %12 = arith.cmpi eq, %10, %11 : vector<8x64xi32>
    %13 = arith.extui %12 : vector<8x64xi1> to vector<8x64xi32>
    %14 = arith.sitofp %13 : vector<8x64xi32> to vector<8x64xf32>
    %c0_11 = arith.constant 0 : index
    %c0_12 = arith.constant 0 : index
    %15 = vector.load %arg7[%c0_11, %c0_12] : memref<8x64xf32, #tpu.memory_space<vmem>>, vector<8x64xf32>
    tpu.vector_store %arg7[%c0_11, %c0_12], %14 {strides = array<i32>} : memref<8x64xf32, #tpu.memory_space<vmem>>, vector<8x64xf32>,
    %16 = vector.extract_strided_slice %5 {offsets = [3, 0], sizes = [5, 64], strides = [1, 1]} : vector<8x64xf32> to vector<5x64xf32>
    %17 = arith.fptosi %16 : vector<5x64xf32> to vector<5x64xi32>
    %18 = arith.sitofp %17 : vector<5x64xi32> to vector<5x64xf32>
    %cst_13 = arith.constant dense<0.000000e+00> : vector<78x64xf32>
    %19 = tpu.matmul %2, %18, %cst_13 {dimension_numbers = #tpu.dot_dimension_numbers<[1], [0], [0], [1], [0, 0, 1, 1], [], []>} : vector<78x5xf32>, vector<5x64xf32>, vector<78x64xf32> -> vector<78x64xf32>
    %20 = vector.broadcast %3 : vector<78x1xf32> to vector<78x64xf32>
    %21 = arith.cmpf oeq, %19, %20 : vector<78x64xf32>
    %22 = arith.extui %21 : vector<78x64xi1> to vector<78x64xi32>
    %23 = arith.sitofp %22 : vector<78x64xi32> to vector<78x64xf32>
    %cst_14 = arith.constant dense<0.000000e+00> : vector<20x64xf32>
    %24 = tpu.matmul %4, %23, %cst_14 {dimension_numbers = #tpu.dot_dimension_numbers<[1], [0], [0], [1], [0, 0, 1, 1], [], []>} : vector<20x78xf32>, vector<78x64xf32>, vector<20x64xf32> -> vector<20x64xf32>
    %c0_15 = arith.constant 0 : index
    %c0_16 = arith.constant 0 : index
    %25 = vector.load %arg8[%c0_15, %c0_16] : memref<20x64xf32, #tpu.memory_space<vmem>>, vector<20x64xf32>
    tpu.vector_store %arg8[%c0_15, %c0_16], %24 {strides = array<i32>} : memref<20x64xf32, #tpu.memory_space<vmem>>, vector<20x64xf32>,
    return
  }
  func.func @transform_0(%arg0: i32) -> (i32, i32) {
    %c0_i32 = arith.constant 0 : i32
    %c0_i32_0 = arith.constant 0 : i32
    return %arg0, %c0_i32 : i32, i32
  }
  func.func @transform_1(%arg0: i32) -> (i32, i32) {
    %c0_i32 = arith.constant 0 : i32
    %c0_i32_0 = arith.constant 0 : i32
    %c0_i32_1 = arith.constant 0 : i32
    return %c0_i32, %c0_i32_0 : i32, i32
  }
  func.func @transform_2(%arg0: i32) -> (i32, i32) {
    %c0_i32 = arith.constant 0 : i32
    %c0_i32_0 = arith.constant 0 : i32
    %c0_i32_1 = arith.constant 0 : i32
    return %c0_i32, %c0_i32_0 : i32, i32
  }
  func.func @transform_3(%arg0: i32) -> (i32, i32) {
    %c0_i32 = arith.constant 0 : i32
    %c0_i32_0 = arith.constant 0 : i32
    %c0_i32_1 = arith.constant 0 : i32
    return %c0_i32, %c0_i32_0 : i32, i32
  }
  func.func @transform_4(%arg0: i32) -> (i32, i32) {
    %c0_i32 = arith.constant 0 : i32
    %c0_i32_0 = arith.constant 0 : i32
    %c0_i32_1 = arith.constant 0 : i32
    return %c0_i32, %c0_i32_0 : i32, i32
  }
  func.func @transform_5(%arg0: i32) -> (i32, i32) {
    %c0_i32 = arith.constant 0 : i32
    %c0_i32_0 = arith.constant 0 : i32
    return %c0_i32, %arg0 : i32, i32
  }
  func.func @transform_6(%arg0: i32) -> (i32, i32) {
    %c0_i32 = arith.constant 0 : i32
    %c0_i32_0 = arith.constant 0 : i32
    return %c0_i32, %arg0 : i32, i32
  }
  func.func @transform_7(%arg0: i32) -> (i32, i32) {
    %c0_i32 = arith.constant 0 : i32
    %c0_i32_0 = arith.constant 0 : i32
    return %c0_i32, %arg0 : i32, i32
  }
}

</mosaic_0001>

<bundles_post_ra>
// kernel: tpu_custom_call.1
= control target key start
LH: loop header
LB: loop body
LE: loop exit
PB: predicated region body
PF: predicated region fallthrough
CT: control target
= control target key end

     0   :  { %13 = vsyncpa [#allocation3], 0  ;;  %vm57_vm0 = vcmask 130048   ;;  %s685_s0 = inlined_call_operand.vmem [shape: f32[64,16], index: 0, kind: input, shape index: {}]   ;;  %s686_s1 = inlined_call_operand.vmem [shape: f32[8,16], index: 1, kind: input, shape index: {}]   ;;  %s687_s2 = inlined_call_operand.vmem [shape: f32[78,5], index: 2, kind: input, shape index: {}]   ;;  %s688_s3 = inlined_call_operand.vmem [shape: f32[78,1], index: 3, kind: input, shape index: {}]   ;;  %s689_s4 = inlined_call_operand.vmem [shape: f32[20,78], index: 4, kind: input, shape index: {}]   ;;  %s690_s5 = inlined_call_operand.hbm [shape: f32[2,64], index: 5, kind: output, shape index: {0}]   ;;  %s691_s6 = inlined_call_operand.hbm [shape: f32[8,64], index: 6, kind: output, shape index: {1}]   ;;  %s692_s7 = inlined_call_operand.hbm [shape: f32[20,64], index: 7, kind: output, shape index: {2}]  }
   0x1   :  { %v32_v0 = vld [vmem:[%s685_s0 + $0x38] sm:$0xff]  ;;  %v31_v1 = vld [vmem:[%s685_s0 + $0x30] sm:$0xff] }
   0x2   :  { %373 = vmatpush.xpose.msk.msra.mxu0 %vm57_vm0, %v32_v0 }
   0x3   :  { %14 = vsyncpa [#allocation5], 0  ;;  %v30_v2 = vld [vmem:[%s685_s0 + $0x28] sm:$0xff]  ;;  %v29_v3 = vld [vmem:[%s685_s0 + $0x20] sm:$0xff]  ;;  %v510_v10 = vmov 0   ;;  %vm105_vm1 = vcmask 518145   ;;  %v108_v15 = vlaneseq }
   0x4   :  { %v28_v4 = vld [vmem:[%s685_s0 + $0x18] sm:$0xff]  ;;  %v27_v5 = vld [vmem:[%s685_s0 + $0x10] sm:$0xff]  ;;  %v26_v6 = vld [vmem:[%s685_s0 + $0x8] sm:$0xff]  ;;  %431 = vset.pattern.permute.xlu0 %v510_v10  ;;  %432 = vset.pattern.permute.xlu1 %v510_v10  ;;  %vm150_vm3 = vcmask 1044480   ;;  %vm114_vm4 = vcmask 523264   ;;  %vm119_vm5 = vcmask 39936  }
   0x5   :  { %v25_v7 = vld [vmem:[%s685_s0] sm:$0xff]  ;;  %v53_v9 = vld [vmem:[%s688_s3 + $0x48] sm:$0x3f]  ;;  %433 = vset.pattern.permute.xlu2 %v510_v10  ;;  %v51_v12 = vld [vmem:[%s688_s3 + $0x38] sm:$0xff]  ;;  %v109_v22 = vshrl.u32 %v108_v15, 7  ;;  %v511_v28 = vmov 0.0  }
   0x6   :  { %374 = vmatpush.xpose.msk.msra.mxu0 %vm57_vm0, %v31_v1  ;;  %v33_v8 = vld [vmem:[%s686_s1] sm:$0xff]  ;;  %247 = vperm.xlu0 %431, %v53_v9   ;;  %v47_v13 = vld [vmem:[%s688_s3 + $0x18] sm:$0xff]  ;;  %v50_v19 = vld [vmem:[%s688_s3 + $0x30] sm:$0xff]  ;;  %vm290_vm7 = vcmask 1045504   ;;  %v512_v58 = vmov 1.0   ;;  %s513_s13 = smov [#allocation4]  }
   0x7   :  { %v52_v11 = vld [vmem:[%s688_s3 + $0x40] sm:$0xff]  ;;  %237 = vperm.xlu1 %432, %v51_v12   ;;  %v39_v26 = vld [vmem:[%s687_s2 + $0x28] sm:$0xff]  ;;  %v46_v31 = vld [vmem:[%s688_s3 + $0x10] sm:$0xff]  ;;  %s340_s14 = sshll.u32 %s513_s13, 4  ;;  %s342_s17 = sshll.u32 %s691_s6, 4  ;;  %s341_s14 = int_to_ptr.vmem [resolvable:$true] %s340_s14  ;;  %s343_s17 = int_to_ptr.hbm [resolvable:$true] %s342_s17 }
   0x8   :  { %v44_v20 = vld [vmem:[%s688_s3] sm:$0xff]  ;;  %v49_v30 = vld [vmem:[%s688_s3 + $0x28] sm:$0xff]  ;;  %v40_v32 = vld [vmem:[%s687_s2 + $0x30] sm:$0xff]  ;;  %s331_s20 = sshll.u32 %s690_s5, 4  ;;  %s514_s21 = smov [#allocation2]   ;;  %s332_s20 = int_to_ptr.hbm [resolvable:$true] %s331_s20 }
   0x9   :  { %v34_v27 = vld [vmem:[%s687_s2] sm:$0xff]  ;;  %227 = vperm.xlu2 %433, %v49_v30   ;;  %v35_v33 = vld [vmem:[%s687_s2 + $0x8] sm:$0xff]  ;;  %v41_v35 = vld [vmem:[%s687_s2 + $0x38] sm:$0xff]  ;;  %s329_s22 = sshll.u32 %s514_s21, 4  ;;  %s352_s1 = sshll.u32 %s692_s7, 4  ;;  %s330_s22 = int_to_ptr.vmem [resolvable:$true] %s329_s22  ;;  %s353_s1 = int_to_ptr.hbm [resolvable:$true] %s352_s1 }
   0xa   :  { %375 = vmatpush.xpose.msk.msra.mxu0 %vm57_vm0, %v30_v2  ;;  %v48_v34 = vld [vmem:[%s688_s3 + $0x20] sm:$0xff]  ;;  %v36_v36 = vld [vmem:[%s687_s2 + $0x10] sm:$0xff]  ;;  %v45_v37 = vld [vmem:[%s688_s3 + $0x8] sm:$0xff]  ;;  %s516_s5 = smov 128   ;;  %s517_s24 = smov 8  }
   0xb   :  { %v42_v38 = vld [vmem:[%s687_s2 + $0x40] sm:$0xff]  ;;  %v37_v39 = vld [vmem:[%s687_s2 + $0x18] sm:$0xff]  ;;  %v43_v40 = vld [vmem:[%s687_s2 + $0x48] sm:$0x3f] }
   0xc   :  { %v38_v41 = vld [vmem:[%s687_s2 + $0x20] sm:$0xff]  ;;  %v55_v1 = vld [vmem:[%s689_s4 + $0x8] sm:$0xff]  ;;  %v56_v2 = vld [vmem:[%s689_s4 + $0x10] sm:$0xf] }
   0xd   :  { %v54_v0 = vld [vmem:[%s689_s4] sm:$0xff]  ;;  %s515_s4 = smov [#allocation6]  }
   0xe   :  { %376 = vmatpush.xpose.msk.msra.mxu0 %vm57_vm0, %v29_v3  ;;  %242 = vperm.xlu0 %431, %v52_v11   ;;  %s350_s6 = sshll.u32 %s515_s4, 4  ;;  %s351_s6 = int_to_ptr.vmem [resolvable:$true] %s350_s6 }
   0xf   :  { %232 = vperm.xlu1 %432, %v50_v19  }
  0x11   :  { %222 = vperm.xlu2 %433, %v48_v34  }
  0x12   :  { %377 = vmatpush.xpose.msk.msra.mxu0 %vm57_vm0, %v28_v4 }
  0x16   :  { %378 = vmatpush.xpose.msk.msra.mxu0 %vm57_vm0, %v27_v5  ;;  %217 = vperm.xlu0 %431, %v47_v13  }
  0x17   :  { %212 = vperm.xlu1 %432, %v46_v31  }
  0x19   :  { %207 = vperm.xlu2 %433, %v45_v37  }
  0x1a   :  { %379 = vmatpush.xpose.msk.msra.mxu0 %vm57_vm0, %v26_v6 }
  0x1e   :  { %380 = vmatpush.xpose.msk.msra.mxu0 %vm57_vm0, %v25_v7  ;;  %202 = vperm.xlu0 %431, %v44_v20  }
  0x21   :  { %381 = vmatmul.msk.f32.vlgmr.msra.gmra.mxu0 %vm57_vm0, %v33_v8 }
  0x63   :  { %v228_v52 = vpop.permute.xlu2 %227 }
  0x6b   :  { %v223_v57 = vpop.permute.xlu2 %222 }
  0x73   :  { %v208_v62 = vpop.permute.xlu2 %207 }
  0x78   :  { %v248_v47 = vpop.permute.xlu0 %247 }
  0x79   :  { %v238_v50 = vpop.permute.xlu1 %237 }
  0x80   :  { %v243_v51 = vpop.permute.xlu0 %242 }
  0x81   :  { %v233_v56 = vpop.permute.xlu1 %232 }
  0x88   :  { %v218_v59 = vpop.permute.xlu0 %217 }
  0x89   :  { %v213_v61 = vpop.permute.xlu1 %212 }
  0x90   :  { %v203_v63 = vpop.permute.xlu0 %202 }
  0x9e   :  { %v102_v14 = vpop.f32.mrf.mxu0 }
  0x9f   :  { %vm418_vm2 = vcmp.lt.s32.totalorder %v102_v14, 0  ;;  %v419_v16 = vceil.f32 %v102_v14  ;;  %v420_v17 = vfloor.f32 %v102_v14  ;;  %106 = vst.msk [vmem:[#allocation2 - $0x1] sm:$0x6] %vm105_vm1, %v102_v14  ;;  %vm280_vm1 = vcmask 637952  }
  0xa0   :  { %334 = dma.vmem_to_hbm [thread:$0]  %s330_s22, 32, %s332_s20, [#allocation3]  }
  0xa1   :  { %v421_v18 = vsel %vm418_vm2, %v419_v16, %v420_v17 }
  0xa2   :  { %v422_v21 = vcvt.f32.s32 %v421_v18 }
  0xa4   :  { %v116_v23 = vcvt.s32.f32 %v422_v21  ;;  %v110_v24 = vperm.slane %v422_v21, 0 }
  0xa6   :  { %v118_v25 = vrot.slane %v116_v23, 3  ;;  %vm111_vm6 = vcmp.eq.s32.totalorder %v109_v22, %v110_v24 }
  0xa7   :  { %v382_v29 = vsel %vm111_vm6, 1.0, %v511_v28 }
  0xa8   :  { %383 = vmatpush.msk.msra.mxu1 %vm150_vm3, %v118_v25  ;;  %417 = vmatpush.msk.msra.mxu3 %vm150_vm3, %v118_v25  ;;  %115 = vst.msk [vmem:[#allocation4] sm:$0xff] %vm114_vm4, %v382_v29  ;;  %vm322_vm3 = vcmask 519168  }
  0xa9   :  { %389 = vmatmul.msk.f32.vlgmr.msra.gmra.mxu3 %vm119_vm5, %v39_v26  ;;  %384 = vmatmul.msk.f32.vlgmr.msra.gmra.mxu1 %vm119_vm5, %v34_v27  ;;  %345 = dma.vmem_to_hbm [thread:$0]  %s341_s14, 128, %s343_s17, [#allocation5]  }
  0xb1   :  { %390 = vmatmul.msk.f32.gmra.mxu3 %vm119_vm5, %v40_v32  ;;  %385 = vmatmul.msk.f32.gmra.mxu1 %vm119_vm5, %v35_v33 }
  0xb9   :  { %391 = vmatmul.msk.f32.gmra.mxu3 %vm119_vm5, %v41_v35  ;;  %386 = vmatmul.msk.f32.gmra.mxu1 %vm119_vm5, %v36_v36 }
  0xc1   :  { %392 = vmatmul.msk.f32.gmra.mxu3 %vm119_vm5, %v42_v38  ;;  %387 = vmatmul.msk.f32.gmra.mxu1 %vm119_vm5, %v37_v39 }
  0xc9   :  { %393 = vmatmul.msk.f32.gmra.mxu3 %vm119_vm5, %v43_v40  ;;  %388 = vmatmul.msk.f32.gmra.mxu1 %vm119_vm5, %v38_v41 }
 0x126   :  { %v170_v43 = vpop.f32.mrf.mxu1 }
 0x127   :  { %vm250_vm2 = vcmp.eq.f32.partialorder %v170_v43, %v203_v63 }
 0x12c   :  { %v185_v42 = vpop.f32.mrf.mxu3 }
 0x12d   :  { %vm255_vm12 = vcmp.eq.f32.partialorder %v185_v42, %v228_v52 }
 0x12e   :  { %v173_v45 = vpop.f32.mrf.mxu1 }
 0x12f   :  { %vm251_vm0 = vcmp.eq.f32.partialorder %v173_v45, %v208_v62 }
 0x134   :  { %v188_v44 = vpop.f32.mrf.mxu3 }
 0x135   :  { %vm256_vm11 = vcmp.eq.f32.partialorder %v188_v44, %v233_v56 }
 0x136   :  { %v176_v48 = vpop.f32.mrf.mxu1 }
 0x137   :  { %vm252_vm15 = vcmp.eq.f32.partialorder %v176_v48, %v213_v61 }
 0x13c   :  { %v191_v46 = vpop.f32.mrf.mxu3 }
 0x13d   :  { %vm257_vm10 = vcmp.eq.f32.partialorder %v191_v46, %v238_v50 }
 0x13e   :  { %v179_v53 = vpop.f32.mrf.mxu1 }
 0x13f   :  { %vm253_vm14 = vcmp.eq.f32.partialorder %v179_v53, %v218_v59 }
 0x144   :  { %v194_v49 = vpop.f32.mrf.mxu3 }
 0x145   :  { %vm258_vm9 = vcmp.eq.f32.partialorder %v194_v49, %v243_v51 }
 0x146   :  { %v182_v60 = vpop.f32.mrf.mxu1 }
 0x147   :  { %vm254_vm13 = vcmp.eq.f32.partialorder %v182_v60, %v223_v57 }
 0x14c   :  { %v197_v54 = vpop.f32.mrf.mxu3 }
 0x14d   :  { %vm259_vm8 = vcmp.eq.f32.partialorder %v197_v54, %v248_v47 }
 0x14e   :  { %v403_v55 = vsel %vm259_vm8, 1.0, %v511_v28 }
 0x14f   :  { %404 = vmatpush.msk.msra.mxu2 %vm290_vm7, %v403_v55 }
 0x151   :  { %405 = vmatpush.msk.msra.mxu2 %vm258_vm9, %v512_v58 }
 0x153   :  { %406 = vmatpush.msk.msra.mxu2 %vm257_vm10, %v512_v58 }
 0x155   :  { %407 = vmatpush.msk.msra.mxu2 %vm256_vm11, %v512_v58 }
 0x157   :  { %408 = vmatpush.msk.msra.mxu2 %vm255_vm12, %v512_v58 }
 0x159   :  { %409 = vmatpush.msk.msra.mxu2 %vm254_vm13, %v512_v58 }
 0x15b   :  { %410 = vmatpush.msk.msra.mxu2 %vm253_vm14, %v512_v58 }
 0x15d   :  { %411 = vmatpush.msk.msra.mxu2 %vm252_vm15, %v512_v58 }
 0x15f   :  { %412 = vmatpush.msk.msra.mxu2 %vm251_vm0, %v512_v58 }
 0x161   :  { %413 = vmatpush.msk.msra.mxu2 %vm250_vm2, %v512_v58 }
 0x162   :  { %414 = vmatmul.msk.f32.vlgmr.msra.gmra.mxu2 %vm280_vm1, %v54_v0 }
 0x16a   :  { %415 = vmatmul.msk.f32.gmra.mxu2 %vm280_vm1, %v55_v1 }
 0x172   :  { %416 = vmatmul.msk.f32.gmra.mxu2 %vm280_vm1, %v56_v2 }
 0x1e5   :  { %v311_v3 = vpop.f32.mrf.mxu2 }
 0x1e6   :  { %320 = vst.msk [vmem:[#allocation6] sm:$0xff] %vm114_vm4, %v311_v3 }
 0x1ed   :  { %v314_v4 = vpop.f32.mrf.mxu2 }
 0x1ee   :  { %321 = vst.msk [vmem:[#allocation6 + $0x8] sm:$0xff] %vm114_vm4, %v314_v4 }
 0x1f5   :  { %v317_v5 = vpop.f32.mrf.mxu2 }
 0x1f6   :  { %323 = vst.msk [vmem:[#allocation6 + $0x10] sm:$0xf] %vm322_vm3, %v317_v5 }
 0x1f7   :  { %358 = dma.vmem_to_hbm [thread:$0]  %s351_s6, 384, %s353_s1, [#allocation5], %s516_s5, %s516_s5, %s517_s24  }
 0x1f8   :  { %506 = dma.done.wait [#allocation3], 32  }
 0x1f9   :  { %507 = vsyncadd [#allocation3], 4294967264 }
 0x1fa   :  { %508 = dma.done.wait [#allocation5], 512  }
 0x1fb   :  { %509 = vsyncadd [#allocation5], 4294966784 }
 0x1fc   :  { %371 = vsyncpa [#allocation3], 1 }
 0x1fd   :  { %372 = vsyncpa [#allocation5], 1 }

</bundles_post_ra>
